<compile_context>
chip_gen: v7x
topology: tpu7x:2x2x1
jax: 0.10.0
libtpu: 0.0.40
codegen_flags: <defaults>
</compile_context>

<pallas_src>
import functools

import jax
import jax.numpy as jnp
from jax.experimental import pallas as pl
from jax.experimental.pallas import tpu as pltpu

HIDDEN = 128
NUM_ACTIONS = 3
PAD = 128  # lane-padded width of the fused head output


def _round_up(n, m):
    return ((n + m - 1) // m) * m


def policy_kernel(x_ref, w1_ref, b1_ref, w2_ref, b2_ref, wh_ref, bh_ref,
                  out_ref):
    x = x_ref[...]                                              # (TB, S) bf16

    # affine1 + relu  (bf16 inputs, f32 accumulation on the MXU)
    h1 = jnp.dot(x, w1_ref[...], preferred_element_type=jnp.float32)
    h1 = jnp.maximum(h1 + b1_ref[...], 0.0)                     # (TB, 128) f32

    # affine2 + relu
    h2 = jnp.dot(h1.astype(jnp.bfloat16), w2_ref[...],
                 preferred_element_type=jnp.float32)
    h2 = jnp.maximum(h2 + b2_ref[...], 0.0)                     # (TB, 128) f32

    # Fused head: lanes 0-2 carry action logits, lane 3 carries the value,
    # lanes 4-127 are zero padding (single MXU pass, single output tile).
    hd = jnp.dot(h2.astype(jnp.bfloat16), wh_ref[...],
                 preferred_element_type=jnp.float32)
    hd = hd + bh_ref[...]                                       # (TB, 128) f32

    # Single (1, 128) lane mask row, broadcast where needed.
    lane = jax.lax.broadcasted_iota(jnp.int32, (1, PAD), 1)
    is_action = lane < NUM_ACTIONS

    # Softmax over the 3 action lanes only: non-action lanes get -1e30 so
    # exp() underflows to exactly 0 in f32 and the 128-lane normalization
    # equals the true 3-way softmax. Exact divide (no approx reciprocal).
    logits = jnp.where(is_action, hd, jnp.float32(-1e30))
    m = jnp.max(logits, axis=-1, keepdims=True)
    e = jnp.exp(logits - m)
    denom = jnp.sum(e, axis=-1, keepdims=True)
    probs = e / denom

    # Lanes 0-2: probabilities; lane 3 (and beyond): raw head output (value).
    out_ref[...] = jnp.where(is_action, probs, hd).astype(out_ref.dtype)


def policy_forward(x, params, *, tile_b=2048):
    """x: (B, state_size) float32. Returns (action_prob (B,3), value (B,1))."""
    B, S = x.shape
    w1, b1, w2, b2, wh, bh = params

    # Tile selection:
    #  * big default tile (2048 rows) to amortize per-grid-step overhead;
    #  * capped at ceil(B/2) so the "parallel" grid has >= 2 steps when B is
    #    large enough -> both TensorCores get work on v7x megacore;
    #  * multiples of 16 rows (bf16 sublane packing), batch padded to match.
    # VMEM: even at 2048 rows the per-step footprint (bf16 x + out tiles,
    # double-buffered, + f32 intermediates) is ~5 MiB, well under the default
    # scoped limit on v5e/v6e/v7x, so no vmem_limit_bytes override is needed.
    tb = min(_round_up(tile_b, 16), max(16, _round_up(pl.cdiv(B, 2), 16)))
    B_pad = _round_up(B, tb)

    x = x.astype(jnp.bfloat16)
    if B_pad != B:
        x = jnp.pad(x, ((0, B_pad - B), (0, 0)))

    grid = (B_pad // tb,)
    full = lambda i: (0, 0)  # weights / biases are grid-invariant (resident)

    out = pl.pallas_call(
        policy_kernel,
        out_shape=jax.ShapeDtypeStruct((B_pad, PAD), jnp.bfloat16),
        grid_spec=pltpu.PrefetchScalarGridSpec(
            num_scalar_prefetch=0,
            grid=grid,
            in_specs=[
                pl.BlockSpec((tb, S), lambda i: (i, 0)),        # x        bf16
                pl.BlockSpec((S, HIDDEN), full),                # W1       bf16
                pl.BlockSpec((1, HIDDEN), full),                # b1       f32
                pl.BlockSpec((HIDDEN, HIDDEN), full),           # W2       bf16
                pl.BlockSpec((1, HIDDEN), full),                # b2       f32
                pl.BlockSpec((HIDDEN, PAD), full),              # fused Wh bf16
                pl.BlockSpec((1, PAD), full),                   # fused bh f32
            ],
            out_specs=pl.BlockSpec((tb, PAD), lambda i: (i, 0)),
        ),
        compiler_params=pltpu.CompilerParams(
            dimension_semantics=("parallel",)),
    )(x, w1, b1, w2, b2, wh, bh)

    out = out[:B].astype(jnp.float32)
    action_prob = out[:, :NUM_ACTIONS]
    state_value = out[:, NUM_ACTIONS:NUM_ACTIONS + 1]
    return action_prob, state_value


def init_params(key, state_size):
    """Deterministic init matching the layer shapes of Policy.__init__.

    Linear weights are stored transposed: (in_features, out_features).
    Returns (kernel_params, raw_params); kernel_params holds bf16 weights and
    the fused lane-padded head, raw_params stays f32 for the reference.
    """
    ks = jax.random.split(key, 8)

    def unif(k, shape, fan_in):
        bound = 1.0 / jnp.sqrt(jnp.float32(fan_in))
        return jax.random.uniform(k, shape, jnp.float32, -bound, bound)

    w1 = unif(ks[0], (state_size, HIDDEN), state_size)
    b1 = unif(ks[1], (1, HIDDEN), state_size)
    w2 = unif(ks[2], (HIDDEN, HIDDEN), HIDDEN)
    b2 = unif(ks[3], (1, HIDDEN), HIDDEN)
    wa = unif(ks[4], (HIDDEN, NUM_ACTIONS), HIDDEN)
    ba = unif(ks[5], (1, NUM_ACTIONS), HIDDEN)
    wv = unif(ks[6], (HIDDEN, 1), HIDDEN)
    bv = unif(ks[7], (1, 1), HIDDEN)

    # Fuse the two heads into one lane-padded (128, 128) weight + (1, 128) bias:
    # lanes 0-2 = action head, lane 3 = value head, lanes 4-127 = zero pad.
    wh = (jnp.zeros((HIDDEN, PAD), jnp.float32)
          .at[:, :NUM_ACTIONS].set(wa)
          .at[:, NUM_ACTIONS:NUM_ACTIONS + 1].set(wv))
    bh = (jnp.zeros((1, PAD), jnp.float32)
          .at[:, :NUM_ACTIONS].set(ba)
          .at[:, NUM_ACTIONS:NUM_ACTIONS + 1].set(bv))

    kernel_params = (w1.astype(jnp.bfloat16), b1,
                     w2.astype(jnp.bfloat16), b2,
                     wh.astype(jnp.bfloat16), bh)
    raw_params = (w1, b1, w2, b2, wa, ba, wv, bv)
    return kernel_params, raw_params


def reference_forward(x, raw_params):
    w1, b1, w2, b2, wa, ba, wv, bv = raw_params
    h1 = jax.nn.relu(x @ w1 + b1)
    h2 = jax.nn.relu(h1 @ w2 + b2)
    prob = jax.nn.softmax(h2 @ wa + ba, axis=-1)
    val = h2 @ wv + bv
    return prob, val


if __name__ == "__main__":
    B, STATE_SIZE = 8, 32
    key = jax.random.PRNGKey(0)
    kp, kx = jax.random.split(key)

    params, raw_params = init_params(kp, STATE_SIZE)
    x = jax.random.normal(kx, (B, STATE_SIZE), jnp.float32)

    fwd = jax.jit(functools.partial(policy_forward, tile_b=2048))
    action_prob, state_value = fwd(x, params)
    jax.block_until_ready((action_prob, state_value))

    ref_prob, ref_val = reference_forward(x, raw_params)
    assert action_prob.shape == (B, NUM_ACTIONS)
    assert state_value.shape == (B, 1)
    # bf16 matmul inputs / bf16 output -> compare against the f32 reference
    # with correspondingly relaxed tolerances (observed error ~1e-3).
    assert jnp.allclose(action_prob, ref_prob, atol=2e-2, rtol=2e-2)
    assert jnp.allclose(state_value, ref_val, atol=3e-2, rtol=3e-2)
    assert jnp.allclose(jnp.sum(action_prob, axis=-1), 1.0, atol=1e-2)

    print("KERNEL_OK")
</pallas_src>

<mosaic_0001>
module attributes {stable_mosaic.version = 11 : i64} {
  func.func @policy_kernel(%arg0: i32, %arg1: memref<16x32xbf16, #tpu.memory_space<vmem>>, %arg2: memref<32x128xbf16, #tpu.memory_space<vmem>>, %arg3: memref<1x128xf32, #tpu.memory_space<vmem>>, %arg4: memref<128x128xbf16, #tpu.memory_space<vmem>>, %arg5: memref<1x128xf32, #tpu.memory_space<vmem>>, %arg6: memref<128x128xbf16, #tpu.memory_space<vmem>>, %arg7: memref<1x128xf32, #tpu.memory_space<vmem>>, %arg8: memref<16x128xbf16, #tpu.memory_space<vmem>>) attributes {dimension_semantics = [#tpu.dimension_semantics<parallel>], iteration_bounds = array<i64: 1>, scalar_prefetch = 0 : i64, scratch_operands = 0 : i64, tpu.core_type = #tpu.core_type<tc>, window_params = [{transform_indices = @transform_0, window_bounds = array<i64: 16, 32>}, {pipeline_mode = #tpu.pipeline_mode<synchronous>, transform_indices = @transform_1, window_bounds = array<i64: 32, 128>}, {pipeline_mode = #tpu.pipeline_mode<synchronous>, transform_indices = @transform_2, window_bounds = array<i64: 1, 128>}, {pipeline_mode = #tpu.pipeline_mode<synchronous>, transform_indices = @transform_3, window_bounds = array<i64: 128, 128>}, {pipeline_mode = #tpu.pipeline_mode<synchronous>, transform_indices = @transform_4, window_bounds = array<i64: 1, 128>}, {pipeline_mode = #tpu.pipeline_mode<synchronous>, transform_indices = @transform_5, window_bounds = array<i64: 128, 128>}, {pipeline_mode = #tpu.pipeline_mode<synchronous>, transform_indices = @transform_6, window_bounds = array<i64: 1, 128>}, {transform_indices = @transform_7, window_bounds = array<i64: 16, 128>}]} {
    %c0 = arith.constant 0 : index
    %c0_0 = arith.constant 0 : index
    %0 = vector.load %arg1[%c0, %c0_0] : memref<16x32xbf16, #tpu.memory_space<vmem>>, vector<16x32xbf16>
    %c0_1 = arith.constant 0 : index
    %c0_2 = arith.constant 0 : index
    %1 = vector.load %arg2[%c0_1, %c0_2] : memref<32x128xbf16, #tpu.memory_space<vmem>>, vector<32x128xbf16>
    %cst = arith.constant dense<0.000000e+00> : vector<16x128xf32>
    %2 = tpu.matmul %0, %1, %cst {dimension_numbers = #tpu.dot_dimension_numbers<[1], [0], [0], [1], [0, 0, 1, 1], [], []>} : vector<16x32xbf16>, vector<32x128xbf16>, vector<16x128xf32> -> vector<16x128xf32>
    %c0_3 = arith.constant 0 : index
    %c0_4 = arith.constant 0 : index
    %3 = vector.load %arg3[%c0_3, %c0_4] : memref<1x128xf32, #tpu.memory_space<vmem>>, vector<1x128xf32>
    %4 = vector.broadcast %3 : vector<1x128xf32> to vector<16x128xf32>
    %5 = arith.addf %2, %4 : vector<16x128xf32>
    %cst_5 = arith.constant 0.000000e+00 : f32
    %6 = vector.broadcast %cst_5 : f32 to vector<16x128xf32>
    %7 = arith.maximumf %5, %6 : vector<16x128xf32>
    %8 = arith.truncf %7 : vector<16x128xf32> to vector<16x128xbf16>
    %c0_6 = arith.constant 0 : index
    %c0_7 = arith.constant 0 : index
    %9 = vector.load %arg4[%c0_6, %c0_7] : memref<128x128xbf16, #tpu.memory_space<vmem>>, vector<128x128xbf16>
    %cst_8 = arith.constant dense<0.000000e+00> : vector<16x128xf32>
    %10 = tpu.matmul %8, %9, %cst_8 {dimension_numbers = #tpu.dot_dimension_numbers<[1], [0], [0], [1], [0, 0, 1, 1], [], []>} : vector<16x128xbf16>, vector<128x128xbf16>, vector<16x128xf32> -> vector<16x128xf32>
    %c0_9 = arith.constant 0 : index
    %c0_10 = arith.constant 0 : index
    %11 = vector.load %arg5[%c0_9, %c0_10] : memref<1x128xf32, #tpu.memory_space<vmem>>, vector<1x128xf32>
    %12 = vector.broadcast %11 : vector<1x128xf32> to vector<16x128xf32>
    %13 = arith.addf %10, %12 : vector<16x128xf32>
    %cst_11 = arith.constant 0.000000e+00 : f32
    %14 = vector.broadcast %cst_11 : f32 to vector<16x128xf32>
    %15 = arith.maximumf %13, %14 : vector<16x128xf32>
    %16 = arith.truncf %15 : vector<16x128xf32> to vector<16x128xbf16>
    %c0_12 = arith.constant 0 : index
    %c0_13 = arith.constant 0 : index
    %17 = vector.load %arg6[%c0_12, %c0_13] : memref<128x128xbf16, #tpu.memory_space<vmem>>, vector<128x128xbf16>
    %cst_14 = arith.constant dense<0.000000e+00> : vector<16x128xf32>
    %18 = tpu.matmul %16, %17, %cst_14 {dimension_numbers = #tpu.dot_dimension_numbers<[1], [0], [0], [1], [0, 0, 1, 1], [], []>} : vector<16x128xbf16>, vector<128x128xbf16>, vector<16x128xf32> -> vector<16x128xf32>
    %c0_15 = arith.constant 0 : index
    %c0_16 = arith.constant 0 : index
    %19 = vector.load %arg7[%c0_15, %c0_16] : memref<1x128xf32, #tpu.memory_space<vmem>>, vector<1x128xf32>
    %20 = vector.broadcast %19 : vector<1x128xf32> to vector<16x128xf32>
    %21 = arith.addf %18, %20 : vector<16x128xf32>
    %22 = tpu.iota {dimensions = array<i32: 1>} : vector<1x128xi32>
    %c3_i32 = arith.constant 3 : i32
    %23 = vector.broadcast %c3_i32 : i32 to vector<1x128xi32>
    %24 = arith.cmpi slt, %22, %23 : vector<1x128xi32>
    %cst_17 = arith.constant -1.000000e+30 : f32
    %25 = vector.shape_cast %24 : vector<1x128xi1> to vector<1x128xi1>
    %26 = vector.broadcast %25 : vector<1x128xi1> to vector<16x128xi1>
    %27 = vector.broadcast %cst_17 : f32 to vector<16x128xf32>
    %28 = arith.select %26, %21, %27 : vector<16x128xi1>, vector<16x128xf32>
    %cst_18 = arith.constant dense<0xFF800000> : vector<16xf32>
    %29 = vector.multi_reduction <maximumf>, %28, %cst_18 [1] : vector<16x128xf32> to vector<16xf32>
    %30 = vector.shape_cast %29 : vector<16xf32> to vector<16x1xf32>
    %31 = vector.broadcast %30 : vector<16x1xf32> to vector<16x128xf32>
    %32 = arith.subf %28, %31 : vector<16x128xf32>
    %33 = math.exp %32 : vector<16x128xf32>
    %cst_19 = arith.constant dense<0.000000e+00> : vector<16xf32>
    %34 = vector.multi_reduction <add>, %33, %cst_19 [1] : vector<16x128xf32> to vector<16xf32>
    %35 = vector.shape_cast %34 : vector<16xf32> to vector<16x1xf32>
    %36 = vector.broadcast %35 : vector<16x1xf32> to vector<16x128xf32>
    %37 = arith.divf %33, %36 : vector<16x128xf32>
    %38 = vector.shape_cast %24 : vector<1x128xi1> to vector<1x128xi1>
    %39 = vector.broadcast %38 : vector<1x128xi1> to vector<16x128xi1>
    %40 = arith.select %39, %37, %21 : vector<16x128xi1>, vector<16x128xf32>
    %41 = arith.truncf %40 : vector<16x128xf32> to vector<16x128xbf16>
    %c0_20 = arith.constant 0 : index
    %c0_21 = arith.constant 0 : index
    %42 = vector.load %arg8[%c0_20, %c0_21] : memref<16x128xbf16, #tpu.memory_space<vmem>>, vector<16x128xbf16>
    tpu.vector_store %arg8[%c0_20, %c0_21], %41 {strides = array<i32>} : memref<16x128xbf16, #tpu.memory_space<vmem>>, vector<16x128xbf16>,
    return
  }
  func.func @transform_0(%arg0: i32) -> (i32, i32) {
    %c0_i32 = arith.constant 0 : i32
    %c0_i32_0 = arith.constant 0 : i32
    return %arg0, %c0_i32 : i32, i32
  }
  func.func @transform_1(%arg0: i32) -> (i32, i32) {
    %c0_i32 = arith.constant 0 : i32
    %c0_i32_0 = arith.constant 0 : i32
    %c0_i32_1 = arith.constant 0 : i32
    return %c0_i32, %c0_i32_0 : i32, i32
  }
  func.func @transform_2(%arg0: i32) -> (i32, i32) {
    %c0_i32 = arith.constant 0 : i32
    %c0_i32_0 = arith.constant 0 : i32
    %c0_i32_1 = arith.constant 0 : i32
    return %c0_i32, %c0_i32_0 : i32, i32
  }
  func.func @transform_3(%arg0: i32) -> (i32, i32) {
    %c0_i32 = arith.constant 0 : i32
    %c0_i32_0 = arith.constant 0 : i32
    %c0_i32_1 = arith.constant 0 : i32
    return %c0_i32, %c0_i32_0 : i32, i32
  }
  func.func @transform_4(%arg0: i32) -> (i32, i32) {
    %c0_i32 = arith.constant 0 : i32
    %c0_i32_0 = arith.constant 0 : i32
    %c0_i32_1 = arith.constant 0 : i32
    return %c0_i32, %c0_i32_0 : i32, i32
  }
  func.func @transform_5(%arg0: i32) -> (i32, i32) {
    %c0_i32 = arith.constant 0 : i32
    %c0_i32_0 = arith.constant 0 : i32
    %c0_i32_1 = arith.constant 0 : i32
    return %c0_i32, %c0_i32_0 : i32, i32
  }
  func.func @transform_6(%arg0: i32) -> (i32, i32) {
    %c0_i32 = arith.constant 0 : i32
    %c0_i32_0 = arith.constant 0 : i32
    %c0_i32_1 = arith.constant 0 : i32
    return %c0_i32, %c0_i32_0 : i32, i32
  }
  func.func @transform_7(%arg0: i32) -> (i32, i32) {
    %c0_i32 = arith.constant 0 : i32
    %c0_i32_0 = arith.constant 0 : i32
    return %arg0, %c0_i32 : i32, i32
  }
}

</mosaic_0001>

<bundles_post_ra>
// kernel: policy_forward.1
= control target key start
LH: loop header
LB: loop body
LE: loop exit
PB: predicated region body
PF: predicated region fallthrough
CT: control target
= control target key end

     0   :  { %12 = vsyncpa [#allocation3], 0  ;;  %s704_s0 = inlined_call_operand.vmem [shape: bf16[16,32], index: 0, kind: input, shape index: {}]   ;;  %s705_s1 = inlined_call_operand.vmem [shape: bf16[32,128], index: 1, kind: input, shape index: {}]   ;;  %s706_s2 = inlined_call_operand.vmem [shape: f32[1,128], index: 2, kind: input, shape index: {}]   ;;  %s707_s3 = inlined_call_operand.hbm [shape: bf16[128,128], index: 3, kind: input, shape index: {}]   ;;  %s708_s4 = inlined_call_operand.vmem [shape: f32[1,128], index: 4, kind: input, shape index: {}]   ;;  %s709_s5 = inlined_call_operand.hbm [shape: bf16[128,128], index: 5, kind: input, shape index: {}]   ;;  %s710_s6 = inlined_call_operand.vmem [shape: f32[1,128], index: 6, kind: input, shape index: {}]   ;;  %s711_s7 = inlined_call_operand.vmem [shape: bf16[16,128], index: 7, kind: output, shape index: {}]  }
   0x1   :  { %13 = vsyncpa [#allocation5], 0  ;;  %s585_s24 = smov [#allocation2]   ;;  %s537_s28 = scalar_lea.hbm %s707_s3, 1024 }
   0x2   :  { %s25_s25 = sshll.u32 %s585_s24, 4  ;;  %p538_p0 = scmp.ne.s32.totalorder %s707_s3, %s537_s28  ;;  %s26_s25 = int_to_ptr.vmem [resolvable:$true] %s25_s25 }
   0x3   :  { %p541_p1 = scmp.lt.u32.totalorder %s537_s28, %s707_s3 }
   0x5   :  { %p543_p2 = pnand %p541_p1, %p538_p0 }
   0x7   :  { %546 = shalt.err (!%p543_p2)
}
   0x8   :  { %s547_s10 = scalar_lea.vmem %s26_s25, 1024  ;;  %p552_p4 = scmp.lt.s32.totalorder %s26_s25, %s26_s25 }
   0x9   :  { %p548_p3 = scmp.ne.s32.totalorder %s26_s25, %s547_s10  ;;  %p553_p5 = scmp.lt.s32.totalorder %s547_s10, %s547_s10 }
   0xb   :  { %p554_p6 = por %p553_p5, %p552_p4 }
   0xd   :  { %p555_p7 = pnand %p554_p6, %p548_p3 }
   0xf   :  { %558 = shalt.err (!%p555_p7)
}
  0x10   :  { %s586_s11 = smov 64   ;;  %s587_s12 = smov 4  }
  0x11   :  { %31 = dma.hbm_to_vmem [thread:$0]  %s707_s3, 1024, %s26_s25, [#allocation3], %s586_s11, %s586_s11, %s587_s12  }
  0x12   :  { %s588_s15 = smov [#allocation4]   ;;  %s559_s19 = scalar_lea.hbm %s709_s5, 1024 }
  0x13   :  { %s39_s16 = sshll.u32 %s588_s15, 4  ;;  %p560_p8 = scmp.ne.s32.totalorder %s709_s5, %s559_s19  ;;  %s40_s16 = int_to_ptr.vmem [resolvable:$true] %s39_s16 }
  0x14   :  { %p563_p9 = scmp.lt.u32.totalorder %s559_s19, %s709_s5 }
  0x16   :  { %p565_p10 = pnand %p563_p9, %p560_p8 }
  0x18   :  { %568 = shalt.err (!%p565_p10)
}
  0x19   :  { %s569_s24 = scalar_lea.vmem %s40_s16, 1024  ;;  %p574_p12 = scmp.lt.s32.totalorder %s40_s16, %s40_s16 }
  0x1a   :  { %p570_p11 = scmp.ne.s32.totalorder %s40_s16, %s569_s24  ;;  %p575_p13 = scmp.lt.s32.totalorder %s569_s24, %s569_s24 }
  0x1c   :  { %p576_p0 = por %p575_p13, %p574_p12 }
  0x1e   :  { %p577_p1 = pnand %p576_p0, %p570_p11 }
  0x20   :  { %580 = shalt.err (!%p577_p1)
}
  0x21   :  { %45 = dma.hbm_to_vmem [thread:$0]  %s709_s5, 1024, %s40_s16, [#allocation5], %s586_s11, %s586_s11, %s587_s12  }
  0x22   :  { %581 = dma.done.wait [#allocation3], 1024  }
  0x23   :  { %582 = vsyncadd [#allocation3], 4294966272 }
  0x24   :  { %583 = dma.done.wait [#allocation5], 1024  }
  0x25   :  { %584 = vsyncadd [#allocation5], 4294966272  ;;  %v589_v0 = vmov 0.0   ;;  %vm590_vm0 = vmmov 0   ;;  %v510_v1 = vld [vmem:[%s705_s1] sm:$0xff]   ;;  %v511_v2 = vld [vmem:[%s705_s1 + $0x8] sm:$0xff]   ;;  %v360_v40 = vlaneseq }
  0x26   :  { %456 = vmatprep.subr.bf16.mxu0 %v589_v0  ;;  %460 = vmatprep.mubr.msk.bf16.mxu0 %vm590_vm0, %v589_v0  ;;  %v513_v3 = vld [vmem:[#allocation2] sm:$0xff]   ;;  %v514_v5 = vld [vmem:[#allocation2 + $0x8] sm:$0xff]   ;;  %vm85_vm1 = vcmask 261120   ;;  %v515_v6 = vld [vmem:[#allocation2 + $0x10] sm:$0xff]  }
  0x27   :  { %464 = vmatprep.subr.bf16.mxu1 %v589_v0  ;;  %480 = vmatprep.mubr.msk.bf16.mxu1 %vm590_vm0, %v589_v0  ;;  %v512_v4 = vld [vmem:[%s704_s0] sm:$0xff]   ;;  %v516_v7 = vld [vmem:[#allocation2 + $0x18] sm:$0xff]   ;;  %v518_v9 = vld [vmem:[#allocation2 + $0x28] sm:$0xff]   ;;  %v361_v41 = vand.u32 127, %v360_v40 }
  0x28   :  { %457 = vmatpush3.bf16.msra.mxu0 %v510_v1  ;;  %465 = vmatpush3.bf16.msra.mxu1 %v513_v3  ;;  %v517_v8 = vld [vmem:[#allocation2 + $0x20] sm:$0xff]   ;;  %v519_v10 = vld [vmem:[#allocation2 + $0x30] sm:$0xff]   ;;  %v520_v11 = vld [vmem:[#allocation2 + $0x38] sm:$0xff]  }
  0x29   :  { %458 = vmatprep.subr.bf16.mxu0 %v589_v0  ;;  %466 = vmatprep.subr.bf16.mxu1 %v589_v0  ;;  %v521_v12 = vld [vmem:[#allocation4] sm:$0xff]   ;;  %v522_v13 = vld [vmem:[#allocation4 + $0x8] sm:$0xff]   ;;  %v523_v14 = vld [vmem:[#allocation4 + $0x10] sm:$0xff]   ;;  %vm362_vm2 = vcmp.lt.s32.totalorder %v361_v41, 3 }
  0x2a   :  { %v524_v15 = vld [vmem:[#allocation4 + $0x18] sm:$0xff]   ;;  %v525_v16 = vld [vmem:[#allocation4 + $0x20] sm:$0xff]   ;;  %v526_v17 = vld [vmem:[#allocation4 + $0x28] sm:$0xff]  }
  0x2b   :  { %v403_v18 = vld [vmem:[%s706_s2] ss:$0 sm:$0xff]  ;;  %v527_v28 = vld [vmem:[#allocation4 + $0x30] sm:$0xff]   ;;  %v528_v29 = vld [vmem:[#allocation4 + $0x38] sm:$0xff]  }
  0x2c   :  { %459 = vmatpush3.bf16.msra.mxu0 %v511_v2  ;;  %467 = vmatpush3.bf16.msra.mxu1 %v514_v5  ;;  %v408_v30 = vld [vmem:[%s708_s4] ss:$0 sm:$0xff] }
  0x2d   :  { %484 = vmatprep.subr.bf16.mxu0 %v589_v0  ;;  %468 = vmatprep.subr.bf16.mxu1 %v589_v0  ;;  %v417_v42 = vld [vmem:[%s710_s6] ss:$0 sm:$0xff] }
  0x2f   :  { %461 = vmatmul.mubr.msk.bf16.vlgmr.msra.gmra.mrb[0].mxu0 %vm85_vm1, %v512_v4 }
  0x30   :  { %500 = vmatprep.mubr.msk.bf16.mxu0 %vm590_vm0, %v589_v0  ;;  %469 = vmatpush3.bf16.msra.mxu1 %v515_v6 }
  0x31   :  { %470 = vmatprep.subr.bf16.mxu1 %v589_v0  ;;  %485 = vmatpush3.bf16.msra.mxu0 %v521_v12 }
  0x32   :  { %486 = vmatprep.subr.bf16.mxu0 %v589_v0 }
  0x34   :  { %471 = vmatpush3.bf16.msra.mxu1 %v516_v7 }
  0x35   :  { %472 = vmatprep.subr.bf16.mxu1 %v589_v0  ;;  %487 = vmatpush3.bf16.msra.mxu0 %v522_v13 }
  0x36   :  { %488 = vmatprep.subr.bf16.mxu0 %v589_v0 }
  0x38   :  { %473 = vmatpush3.bf16.msra.mxu1 %v517_v8 }
  0x39   :  { %474 = vmatprep.subr.bf16.mxu1 %v589_v0  ;;  %489 = vmatpush3.bf16.msra.mxu0 %v523_v14 }
  0x3a   :  { %490 = vmatprep.subr.bf16.mxu0 %v589_v0 }
  0x3c   :  { %475 = vmatpush3.bf16.msra.mxu1 %v518_v9 }
  0x3d   :  { %476 = vmatprep.subr.bf16.mxu1 %v589_v0  ;;  %491 = vmatpush3.bf16.msra.mxu0 %v524_v15 }
  0x3e   :  { %492 = vmatprep.subr.bf16.mxu0 %v589_v0 }
  0x40   :  { %477 = vmatpush3.bf16.msra.mxu1 %v519_v10 }
  0x41   :  { %478 = vmatprep.subr.bf16.mxu1 %v589_v0  ;;  %493 = vmatpush3.bf16.msra.mxu0 %v525_v16 }
  0x42   :  { %494 = vmatprep.subr.bf16.mxu0 %v589_v0 }
  0x44   :  { %479 = vmatpush3.bf16.msra.mxu1 %v520_v11 }
  0x45   :  { %495 = vmatpush3.bf16.msra.mxu0 %v526_v17 }
  0x46   :  { %496 = vmatprep.subr.bf16.mxu0 %v589_v0 }
  0x49   :  { %497 = vmatpush3.bf16.msra.mxu0 %v527_v28 }
  0x4a   :  { %498 = vmatprep.subr.bf16.mxu0 %v589_v0 }
  0x4d   :  { %499 = vmatpush3.bf16.msra.mxu0 %v528_v29 }
 0x102   :  { %v123_v19 = vpop.f32.mrb[0].mxu0 }
 0x103   :  { %v124_v20 = vadd.f32 %v403_v18, %v123_v19  ;;  %v462_v21 = vpop.f32.mrb[1].mxu0 }
 0x104   :  { %v126_v22 = vpop.f32.mrb[2].mxu0 }
 0x105   :  { %v127_v23 = vadd.f32 %v403_v18, %v126_v22  ;;  %v463_v24 = vpop.f32.mrb[3].mxu0  ;;  %v130_v25 = vmax.f32 %v124_v20, 0.0 }
 0x107   :  { %v131_v26 = vmax.f32 %v127_v23, 0.0 }
 0x109   :  { %v132_v27 = vpack.c.bf16 %v131_v26, %v130_v25 }
 0x10b   :  { %481 = vmatmul.mubr.bf16.vlgmr.msra.gmra.mrb[0].mxu1 %v132_v27 }
 0x1de   :  { %v238_v31 = vpop.f32.mrb[0].mxu1 }
 0x1df   :  { %v239_v32 = vadd.f32 %v408_v30, %v238_v31  ;;  %v482_v33 = vpop.f32.mrb[1].mxu1 }
 0x1e0   :  { %v241_v34 = vpop.f32.mrb[2].mxu1 }
 0x1e1   :  { %v242_v35 = vadd.f32 %v408_v30, %v241_v34  ;;  %v483_v36 = vpop.f32.mrb[3].mxu1  ;;  %v245_v37 = vmax.f32 %v239_v32, 0.0 }
 0x1e3   :  { %v246_v38 = vmax.f32 %v242_v35, 0.0 }
 0x1e5   :  { %v247_v39 = vpack.c.bf16 %v246_v38, %v245_v37 }
 0x1e7   :  { %501 = vmatmul.mubr.bf16.vlgmr.msra.gmra.mrb[4].mxu0 %v247_v39 }
 0x2ba   :  { %v353_v43 = vpop.f32.mrb[4].mxu0 }
 0x2bb   :  { %v354_v44 = vadd.f32 %v417_v42, %v353_v43  ;;  %v502_v45 = vpop.f32.mrb[5].mxu0 }
 0x2bc   :  { %v356_v46 = vpop.f32.mrb[6].mxu0 }
 0x2bd   :  { %v357_v47 = vadd.f32 %v417_v42, %v356_v46  ;;  %v503_v48 = vpop.f32.mrb[7].mxu0  ;;  %v365_v49 = vsel %vm362_vm2, %v354_v44, -1e+30 }
 0x2be   :  { %367 = vmax.xlane.f32.xlu0 %v365_v49 }
 0x2bf   :  { %v366_v50 = vsel %vm362_vm2, %v357_v47, -1e+30 }
 0x2c2   :  { %369 = vmax.xlane.f32.xlu0 %v366_v50 }
 0x34b   :  { %v368_v51 = vpop.xlane.xlu0 %367 }
 0x34c   :  { %v371_v52 = vsub.f32 %v365_v49, %v368_v51 }
 0x34e   :  { %v373_v53 = vmul.f32 1.442695, %v371_v52 }
 0x34f   :  { %v370_v54 = vpop.xlane.xlu0 %369 }
 0x350   :  { %529 = vpow2.f32 %v373_v53  ;;  %v372_v55 = vsub.f32 %v366_v50, %v370_v54 }
 0x352   :  { %v375_v56 = vmul.f32 1.442695, %v372_v55 }
 0x354   :  { %531 = vpow2.f32 %v375_v56 }
 0x35a   :  { %v530_v57 = vpop.eup %529 }
 0x35b   :  { %377 = vadd.xlane.f32.xlu1 %v530_v57 }
 0x35e   :  { %v532_v58 = vpop.eup %531 }
 0x35f   :  { %379 = vadd.xlane.f32.xlu1 %v532_v58 }
 0x3e8   :  { %v378_v59 = vpop.xlane.xlu1 %377 }
 0x3e9   :  { %533 = vrcp.f32 %v378_v59 }
 0x3ec   :  { %v380_v60 = vpop.xlane.xlu1 %379 }
 0x3ed   :  { %535 = vrcp.f32 %v380_v60 }
 0x3f3   :  { %v534_v61 = vpop.eup %533 }
 0x3f4   :  { %v382_v62 = vmul.f32 %v534_v61, %v530_v57 }
 0x3f6   :  { %v385_v1 = vsel %vm362_vm2, %v382_v62, %v354_v44 }
 0x3f7   :  { %v536_v63 = vpop.eup %535 }
 0x3f8   :  { %v384_v0 = vmul.f32 %v536_v63, %v532_v58 }
 0x3fa   :  { %v386_v2 = vsel %vm362_vm2, %v384_v0, %v357_v47 }
 0x3fb   :  { %v433_v3 = vpack.c.bf16 %v386_v2, %v385_v1 }
 0x3fd   :  { %434 = vst [vmem:[%s711_s7] sm:$0xff] %v433_v3  }
 0x3fe   :  { %401 = vsyncpa [#allocation3], 1 }
 0x3ff   :  { %402 = vsyncpa [#allocation5], 1 }

</bundles_post_ra>
